<compile_context>
chip_gen: v5e
topology: v5e:2x2
jax: 0.10.0
libtpu: 0.0.40
codegen_flags: <defaults>
</compile_context>

<pallas_src>
import functools

import jax
import jax.numpy as jnp
import numpy as np
from jax.experimental import pallas as pl
from jax.experimental.pallas import tpu as pltpu

_LANE = 128
_STEP_BUDGET_BYTES = 8 << 20  # per-grid-step padded VMEM footprint target (all chips)


# ---------------------------------------------------------------------------
# Helpers: chip query, padded-VMEM footprint, batch-block selection.
# ---------------------------------------------------------------------------
def _round_up(v, m):
    return -(-v // m) * m


def _sublane_multiple(dtype):
    # Native VMEM tile is (8, 128) 32-bit words; sub-32-bit dtypes pack along sublanes.
    itemsize = jnp.dtype(dtype).itemsize
    return 8 * max(1, 4 // max(1, itemsize))


def _padded_block_bytes(shape, dtype):
    """Approx. VMEM bytes of a block: last dim padded to 128 lanes, second-to-last to
    the dtype's sublane multiple (the review's padded-footprint fix)."""
    itemsize = jnp.dtype(dtype).itemsize
    if len(shape) == 1:
        return _round_up(int(shape[0]), _LANE) * itemsize
    lead = 1
    for d in shape[:-2]:
        lead *= int(d)
    sub = _sublane_multiple(dtype)
    return lead * _round_up(int(shape[-2]), sub) * _round_up(int(shape[-1]), _LANE) * itemsize


@functools.lru_cache(maxsize=None)
def _multi_tensorcore_chip():
    """True on chips with 2 TensorCores (v4/v5p/v7x) where splitting the batch grid
    axis helps; v5e/v6e have one TC, so the largest block wins there instead."""
    try:
        kind = jax.devices()[0].device_kind.lower()
    except Exception:
        return True  # conservative default: keep >=2 grid steps
    single_tc = any(
        t in kind for t in ("v5e", "v5 lite", "v5lite", "v6e", "v6 lite", "v6lite")
    )
    return not single_tc


def _divisors_desc(n):
    return [d for d in range(n, 0, -1) if n % d == 0]


def _pick_nb(n, step_bytes_fn, *, flat_sublane_rule):
    """Largest batch block that (a) divides N, (b) fits the padded-VMEM budget,
    (c) for flat 2-D blocks keeps the sublane block dim legal (== N or a multiple of 8),
    (d) on 2-TC chips prefers leaving >=2 grid steps for megacore splitting.
    Returns None when no legal lane-dense block exists (caller falls back to 4-D).
    Note: for very large single images one could additionally fold C into the grid."""
    cands = []
    for d in _divisors_desc(n):
        if flat_sublane_rule and not (d == n or d % 8 == 0):
            continue
        if step_bytes_fn(d) <= _STEP_BUDGET_BYTES:
            cands.append(d)
    if not cands:
        return None if flat_sublane_rule else 1
    if _multi_tensorcore_chip() and n >= 2:
        split = [d for d in cands if d <= n // 2]
        if split:
            return split[0]  # largest block that still leaves >=2 grid steps
    return cands[0]


def _compiler_params():
    return pltpu.CompilerParams(dimension_semantics=("parallel",))


# ---------------------------------------------------------------------------
# Kernels.
# ---------------------------------------------------------------------------
def _copy_zeros_flat_kernel(x_ref, o_ref, *, l_half):
    # stride == 1: AvgPool2d(k=1, s=1) is the identity -> lane-dense copy plus the
    # x.mul(0) half, written as two wide 128-aligned stores.
    x = x_ref[...]                      # (nb, C*H*W), lane-dense
    o_ref[:, :l_half] = x
    o_ref[:, l_half:] = x * 0           # matches torch x.mul(0) (propagates NaN/Inf)


def _strided_flat_kernel(x_ref, o_ref, *, stride, h_out, w_out, l_half):
    # stride > 1, lane-dense output path.
    x = x_ref[...]                      # (nb, C, H, W)
    nb, c, h, w = x.shape

    # --- H subsample (sublane dim): reshape trick + explicit ceil-mode remainder row.
    h_floor = h // stride
    parts = []
    if h_floor > 0:
        xh5 = x[:, :, : h_floor * stride, :].reshape(nb, c, h_floor, stride, w)
        parts.append(xh5[:, :, :, 0, :])              # rows 0, s, ..., (h_floor-1)*s
    if h_out > h_floor:                               # (h-1) % stride != 0 remainder
        parts.append(x[:, :, h_floor * stride: h_floor * stride + 1, :])
    xh = parts[0] if len(parts) == 1 else jnp.concatenate(parts, axis=2)  # (nb,c,Ho,W)

    # --- W subsample (lane dim): static unit-width slices + one concat.  (A lane-dim
    # split reshape to a trailing dim of size `stride` is the worst-supported relayout;
    # Wo is small and these slices run on the already H-subsampled block.)
    pooled = jnp.concatenate(
        [xh[:, :, :, j * stride: j * stride + 1] for j in range(w_out)], axis=3
    )                                                 # (nb, c, Ho, Wo)

    # --- Lane-dense store: one flatten, then two wide stores (pooled half, x*0 half).
    flat = pooled.reshape(nb, l_half)
    o_ref[:, :l_half] = flat
    o_ref[:, l_half:] = flat * 0        # matches torch x.mul(0) (propagates NaN/Inf)


def _strided_nchw_kernel(x_ref, o_ref, *, stride, h_out, w_out):
    # Fallback (proven to lower on all Mosaic versions): 4-D NCHW blocks, unit-width
    # slices on both spatial dims, channel concat, single full-block store.
    x = x_ref[...]                      # (nb, C, H, W)
    if stride == 1:
        pooled = x
    else:
        xh = jnp.concatenate(
            [x[:, :, i * stride: i * stride + 1, :] for i in range(h_out)], axis=2)
        pooled = jnp.concatenate(
            [xh[:, :, :, j * stride: j * stride + 1] for j in range(w_out)], axis=3)
    o_ref[...] = jnp.concatenate([pooled, pooled * 0], axis=1)


# ---------------------------------------------------------------------------
# pallas_call wrappers for the three layouts.
# ---------------------------------------------------------------------------
def _downsample_stride1_flat(x):
    n, c, h, w = x.shape
    l_half = c * h * w

    def step_bytes(nb):
        return (2 * _padded_block_bytes((nb, l_half), x.dtype)        # in  (dbl buf)
                + 2 * _padded_block_bytes((nb, 2 * l_half), x.dtype)  # out (dbl buf)
                + _padded_block_bytes((nb, l_half), x.dtype))         # live value

    nb = _pick_nb(n, step_bytes, flat_sublane_rule=True)
    if nb is None:
        return None

    x_flat = x.reshape(n, l_half)  # free: collapses contiguous trailing dims
    kernel = functools.partial(_copy_zeros_flat_kernel, l_half=l_half)
    out = pl.pallas_call(
        kernel,
        out_shape=jax.ShapeDtypeStruct((n, 2 * l_half), x.dtype),
        grid_spec=pltpu.PrefetchScalarGridSpec(
            num_scalar_prefetch=0,
            grid=(n // nb,),
            in_specs=[pl.BlockSpec((nb, l_half), lambda b: (b, 0))],
            out_specs=pl.BlockSpec((nb, 2 * l_half), lambda b: (b, 0)),
        ),
        compiler_params=_compiler_params(),
    )(x_flat)
    return out.reshape(n, 2 * c, h, w)


def _downsample_strided_flat(x, stride):
    n, c, h, w = x.shape
    h_out = (h - 1) // stride + 1
    w_out = (w - 1) // stride + 1
    l_half = c * h_out * w_out

    def step_bytes(nb):
        return (2 * _padded_block_bytes((nb, c, h, w), x.dtype)            # in (dbl buf)
                + 2 * _padded_block_bytes((nb, 2 * l_half), x.dtype)       # out (dbl buf)
                + _padded_block_bytes((nb, c, h_out, w), x.dtype)          # H-subsampled
                + _padded_block_bytes((nb, c, h_out, w_out), x.dtype)      # pooled (padded)
                + 2 * _padded_block_bytes((nb, l_half), x.dtype))          # flatten scratch

    nb = _pick_nb(n, step_bytes, flat_sublane_rule=True)
    if nb is None:
        return None

    kernel = functools.partial(
        _strided_flat_kernel, stride=stride, h_out=h_out, w_out=w_out, l_half=l_half)
    out = pl.pallas_call(
        kernel,
        out_shape=jax.ShapeDtypeStruct((n, 2 * l_half), x.dtype),
        grid_spec=pltpu.PrefetchScalarGridSpec(
            num_scalar_prefetch=0,
            grid=(n // nb,),
            in_specs=[pl.BlockSpec((nb, c, h, w), lambda b: (b, 0, 0, 0))],
            out_specs=pl.BlockSpec((nb, 2 * l_half), lambda b: (b, 0)),
        ),
        compiler_params=_compiler_params(),
    )(x)
    return out.reshape(n, 2 * c, h_out, w_out)


def _downsample_nchw(x, stride):
    n, c, h, w = x.shape
    h_out = (h - 1) // stride + 1
    w_out = (w - 1) // stride + 1

    def step_bytes(nb):
        return (2 * _padded_block_bytes((nb, c, h, w), x.dtype)
                + 2 * _padded_block_bytes((nb, 2 * c, h_out, w_out), x.dtype)
                + _padded_block_bytes((nb, c, h_out, w), x.dtype)
                + 2 * _padded_block_bytes((nb, 2 * c, h_out, w_out), x.dtype))

    nb = _pick_nb(n, step_bytes, flat_sublane_rule=False)

    kernel = functools.partial(
        _strided_nchw_kernel, stride=stride, h_out=h_out, w_out=w_out)
    return pl.pallas_call(
        kernel,
        out_shape=jax.ShapeDtypeStruct((n, 2 * c, h_out, w_out), x.dtype),
        grid_spec=pltpu.PrefetchScalarGridSpec(
            num_scalar_prefetch=0,
            grid=(n // nb,),
            in_specs=[pl.BlockSpec((nb, c, h, w), lambda b: (b, 0, 0, 0))],
            out_specs=pl.BlockSpec((nb, 2 * c, h_out, w_out), lambda b: (b, 0, 0, 0)),
        ),
        compiler_params=_compiler_params(),
    )(x)


@functools.lru_cache(maxsize=None)
def _flat_layout_supported(stride, dtype_name):
    """Compile/run the lane-dense strided kernel once on a tiny input.  If this
    jax/Mosaic build rejects its in-kernel relayout reshapes we fall back to the
    proven 4-D layout (correctness is never at risk, only the store width)."""
    try:
        dim = 2 * stride + 1  # also exercises the ceil-mode remainder row/col
        x = jnp.zeros((2, 2, dim, dim), jnp.dtype(dtype_name))
        out = _downsample_strided_flat(x, stride)
        if out is None:
            return False
        jax.block_until_ready(out)
        return True
    except Exception:
        return False


def downsample_a(x, stride):
    """Pallas equivalent of DownsampleA.forward (NCHW in, NCHW out)."""
    if x.ndim != 4:
        raise ValueError("expected NCHW input")
    stride = int(stride)
    if stride == 1:
        out = _downsample_stride1_flat(x)
        if out is not None:
            return out
    elif _flat_layout_supported(stride, str(x.dtype)):
        out = _downsample_strided_flat(x, stride)
        if out is not None:
            return out
    # Fallback: proven 4-D NCHW-block kernel (also used when no legal lane-dense
    # batch block exists for this N / VMEM budget).
    return _downsample_nchw(x, stride)


if __name__ == "__main__":
    key = jax.random.PRNGKey(0)
    k1, k2, k3 = jax.random.split(key, 3)

    def reference(x, stride):
        pooled = x[:, :, ::stride, ::stride]  # AvgPool2d(kernel_size=1, stride)
        return jnp.concatenate([pooled, pooled * 0], axis=1)  # cat((x, x.mul(0)), 1)

    # DownsampleA(nIn=4, nOut=8, stride=2): nIn/nOut do not affect the forward math.
    x = jax.random.normal(k1, (2, 4, 16, 16), dtype=jnp.float32)
    out = jax.block_until_ready(downsample_a(x, 2))
    np.testing.assert_allclose(np.asarray(out), np.asarray(reference(x, 2)), rtol=0, atol=0)

    # Non-divisible spatial size (AvgPool2d ceil_mode=False sizing + remainder row/col).
    x2 = jax.random.normal(k2, (2, 4, 15, 15), dtype=jnp.float32)
    out2 = jax.block_until_ready(downsample_a(x2, 2))
    np.testing.assert_allclose(np.asarray(out2), np.asarray(reference(x2, 2)), rtol=0, atol=0)

    # stride == 1 (pure lane-dense copy path).
    x3 = jax.random.normal(k3, (2, 4, 8, 8), dtype=jnp.float32)
    out3 = jax.block_until_ready(downsample_a(x3, 1))
    np.testing.assert_allclose(np.asarray(out3), np.asarray(reference(x3, 1)), rtol=0, atol=0)

    print("KERNEL_OK")
</pallas_src>

<mosaic_0001>
module attributes {stable_mosaic.version = 11 : i64} {
  func.func @_strided_flat_kernel(%arg0: i32, %arg1: memref<2x2x5x5xf32, #tpu.memory_space<vmem>>, %arg2: memref<2x36xf32, #tpu.memory_space<vmem>>) attributes {dimension_semantics = [#tpu.dimension_semantics<parallel>], iteration_bounds = array<i64: 1>, scalar_prefetch = 0 : i64, scratch_operands = 0 : i64, tpu.core_type = #tpu.core_type<tc>, window_params = [{transform_indices = @transform_0, window_bounds = array<i64: 2, 2, 5, 5>}, {transform_indices = @transform_1, window_bounds = array<i64: 2, 36>}]} {
    %c0 = arith.constant 0 : index
    %c0_0 = arith.constant 0 : index
    %c0_1 = arith.constant 0 : index
    %c0_2 = arith.constant 0 : index
    %0 = vector.load %arg1[%c0, %c0_0, %c0_1, %c0_2] : memref<2x2x5x5xf32, #tpu.memory_space<vmem>>, vector<2x2x5x5xf32>
    %1 = vector.extract_strided_slice %0 {offsets = [0, 0, 0, 0], sizes = [2, 2, 4, 5], strides = [1, 1, 1, 1]} : vector<2x2x5x5xf32> to vector<2x2x4x5xf32>
    %2 = vector.shape_cast %1 : vector<2x2x4x5xf32> to vector<2x2x2x2x5xf32>
    %3 = vector.extract_strided_slice %2 {offsets = [0, 0, 0, 0, 0], sizes = [2, 2, 2, 1, 5], strides = [1, 1, 1, 1, 1]} : vector<2x2x2x2x5xf32> to vector<2x2x2x1x5xf32>
    %4 = vector.shape_cast %3 : vector<2x2x2x1x5xf32> to vector<2x2x2x5xf32>
    %5 = vector.extract_strided_slice %0 {offsets = [0, 0, 4, 0], sizes = [2, 2, 1, 5], strides = [1, 1, 1, 1]} : vector<2x2x5x5xf32> to vector<2x2x1x5xf32>
    %6 = tpu.concatenate %4, %5 in 2 : vector<2x2x2x5xf32>, vector<2x2x1x5xf32> -> vector<2x2x3x5xf32>
    %7 = vector.extract_strided_slice %6 {offsets = [0, 0, 0, 0], sizes = [2, 2, 3, 1], strides = [1, 1, 1, 1]} : vector<2x2x3x5xf32> to vector<2x2x3x1xf32>
    %8 = vector.extract_strided_slice %6 {offsets = [0, 0, 0, 2], sizes = [2, 2, 3, 1], strides = [1, 1, 1, 1]} : vector<2x2x3x5xf32> to vector<2x2x3x1xf32>
    %9 = vector.extract_strided_slice %6 {offsets = [0, 0, 0, 4], sizes = [2, 2, 3, 1], strides = [1, 1, 1, 1]} : vector<2x2x3x5xf32> to vector<2x2x3x1xf32>
    %10 = tpu.concatenate %7, %8, %9 in 3 : vector<2x2x3x1xf32>, vector<2x2x3x1xf32>, vector<2x2x3x1xf32> -> vector<2x2x3x3xf32>
    %11 = vector.shape_cast %10 : vector<2x2x3x3xf32> to vector<2x18xf32>
    %c0_3 = arith.constant 0 : index
    %c0_4 = arith.constant 0 : index
    %12 = vector.load %arg2[%c0_3, %c0_4] : memref<2x36xf32, #tpu.memory_space<vmem>>, vector<2x18xf32>
    tpu.vector_store %arg2[%c0_3, %c0_4], %11 {strides = array<i32>} : memref<2x36xf32, #tpu.memory_space<vmem>>, vector<2x18xf32>,
    %cst = arith.constant 0.000000e+00 : f32
    %13 = vector.broadcast %cst : f32 to vector<2x18xf32>
    %14 = arith.mulf %11, %13 : vector<2x18xf32>
    %c0_5 = arith.constant 0 : index
    %c18 = arith.constant 18 : index
    %15 = vector.load %arg2[%c0_5, %c18] : memref<2x36xf32, #tpu.memory_space<vmem>>, vector<2x18xf32>
    tpu.vector_store %arg2[%c0_5, %c18], %14 {strides = array<i32>} : memref<2x36xf32, #tpu.memory_space<vmem>>, vector<2x18xf32>,
    return
  }
  func.func @transform_0(%arg0: i32) -> (i32, i32, i32, i32) {
    %c0_i32 = arith.constant 0 : i32
    %c0_i32_0 = arith.constant 0 : i32
    %c0_i32_1 = arith.constant 0 : i32
    %c0_i32_2 = arith.constant 0 : i32
    return %arg0, %c0_i32, %c0_i32_0, %c0_i32_1 : i32, i32, i32, i32
  }
  func.func @transform_1(%arg0: i32) -> (i32, i32) {
    %c0_i32 = arith.constant 0 : i32
    %c0_i32_0 = arith.constant 0 : i32
    return %arg0, %c0_i32 : i32, i32
  }
}

module attributes {stable_mosaic.version = 11 : i64} {
  func.func @_strided_nchw_kernel(%arg0: i32, %arg1: memref<1x4x16x16xf32, #tpu.memory_space<vmem>>, %arg2: memref<1x8x8x8xf32, #tpu.memory_space<vmem>>) attributes {dimension_semantics = [#tpu.dimension_semantics<parallel>], iteration_bounds = array<i64: 2>, scalar_prefetch = 0 : i64, scratch_operands = 0 : i64, tpu.core_type = #tpu.core_type<tc>, window_params = [{transform_indices = @transform_0, window_bounds = array<i64: 1, 4, 16, 16>}, {transform_indices = @transform_1, window_bounds = array<i64: 1, 8, 8, 8>}]} {
    %c0 = arith.constant 0 : index
    %c0_0 = arith.constant 0 : index
    %c0_1 = arith.constant 0 : index
    %c0_2 = arith.constant 0 : index
    %0 = vector.load %arg1[%c0, %c0_0, %c0_1, %c0_2] : memref<1x4x16x16xf32, #tpu.memory_space<vmem>>, vector<1x4x16x16xf32>
    %1 = vector.extract_strided_slice %0 {offsets = [0, 0, 0, 0], sizes = [1, 4, 1, 16], strides = [1, 1, 1, 1]} : vector<1x4x16x16xf32> to vector<1x4x1x16xf32>
    %2 = vector.extract_strided_slice %0 {offsets = [0, 0, 2, 0], sizes = [1, 4, 1, 16], strides = [1, 1, 1, 1]} : vector<1x4x16x16xf32> to vector<1x4x1x16xf32>
    %3 = vector.extract_strided_slice %0 {offsets = [0, 0, 4, 0], sizes = [1, 4, 1, 16], strides = [1, 1, 1, 1]} : vector<1x4x16x16xf32> to vector<1x4x1x16xf32>
    %4 = vector.extract_strided_slice %0 {offsets = [0, 0, 6, 0], sizes = [1, 4, 1, 16], strides = [1, 1, 1, 1]} : vector<1x4x16x16xf32> to vector<1x4x1x16xf32>
    %5 = vector.extract_strided_slice %0 {offsets = [0, 0, 8, 0], sizes = [1, 4, 1, 16], strides = [1, 1, 1, 1]} : vector<1x4x16x16xf32> to vector<1x4x1x16xf32>
    %6 = vector.extract_strided_slice %0 {offsets = [0, 0, 10, 0], sizes = [1, 4, 1, 16], strides = [1, 1, 1, 1]} : vector<1x4x16x16xf32> to vector<1x4x1x16xf32>
    %7 = vector.extract_strided_slice %0 {offsets = [0, 0, 12, 0], sizes = [1, 4, 1, 16], strides = [1, 1, 1, 1]} : vector<1x4x16x16xf32> to vector<1x4x1x16xf32>
    %8 = vector.extract_strided_slice %0 {offsets = [0, 0, 14, 0], sizes = [1, 4, 1, 16], strides = [1, 1, 1, 1]} : vector<1x4x16x16xf32> to vector<1x4x1x16xf32>
    %9 = tpu.concatenate %1, %2, %3, %4, %5, %6, %7, %8 in 2 : vector<1x4x1x16xf32>, vector<1x4x1x16xf32>, vector<1x4x1x16xf32>, vector<1x4x1x16xf32>, vector<1x4x1x16xf32>, vector<1x4x1x16xf32>, vector<1x4x1x16xf32>, vector<1x4x1x16xf32> -> vector<1x4x8x16xf32>
    %10 = vector.extract_strided_slice %9 {offsets = [0, 0, 0, 0], sizes = [1, 4, 8, 1], strides = [1, 1, 1, 1]} : vector<1x4x8x16xf32> to vector<1x4x8x1xf32>
    %11 = vector.extract_strided_slice %9 {offsets = [0, 0, 0, 2], sizes = [1, 4, 8, 1], strides = [1, 1, 1, 1]} : vector<1x4x8x16xf32> to vector<1x4x8x1xf32>
    %12 = vector.extract_strided_slice %9 {offsets = [0, 0, 0, 4], sizes = [1, 4, 8, 1], strides = [1, 1, 1, 1]} : vector<1x4x8x16xf32> to vector<1x4x8x1xf32>
    %13 = vector.extract_strided_slice %9 {offsets = [0, 0, 0, 6], sizes = [1, 4, 8, 1], strides = [1, 1, 1, 1]} : vector<1x4x8x16xf32> to vector<1x4x8x1xf32>
    %14 = vector.extract_strided_slice %9 {offsets = [0, 0, 0, 8], sizes = [1, 4, 8, 1], strides = [1, 1, 1, 1]} : vector<1x4x8x16xf32> to vector<1x4x8x1xf32>
    %15 = vector.extract_strided_slice %9 {offsets = [0, 0, 0, 10], sizes = [1, 4, 8, 1], strides = [1, 1, 1, 1]} : vector<1x4x8x16xf32> to vector<1x4x8x1xf32>
    %16 = vector.extract_strided_slice %9 {offsets = [0, 0, 0, 12], sizes = [1, 4, 8, 1], strides = [1, 1, 1, 1]} : vector<1x4x8x16xf32> to vector<1x4x8x1xf32>
    %17 = vector.extract_strided_slice %9 {offsets = [0, 0, 0, 14], sizes = [1, 4, 8, 1], strides = [1, 1, 1, 1]} : vector<1x4x8x16xf32> to vector<1x4x8x1xf32>
    %18 = tpu.concatenate %10, %11, %12, %13, %14, %15, %16, %17 in 3 : vector<1x4x8x1xf32>, vector<1x4x8x1xf32>, vector<1x4x8x1xf32>, vector<1x4x8x1xf32>, vector<1x4x8x1xf32>, vector<1x4x8x1xf32>, vector<1x4x8x1xf32>, vector<1x4x8x1xf32> -> vector<1x4x8x8xf32>
    %cst = arith.constant 0.000000e+00 : f32
    %19 = vector.broadcast %cst : f32 to vector<1x4x8x8xf32>
    %20 = arith.mulf %18, %19 : vector<1x4x8x8xf32>
    %21 = tpu.concatenate %18, %20 in 1 : vector<1x4x8x8xf32>, vector<1x4x8x8xf32> -> vector<1x8x8x8xf32>
    %c0_3 = arith.constant 0 : index
    %c0_4 = arith.constant 0 : index
    %c0_5 = arith.constant 0 : index
    %c0_6 = arith.constant 0 : index
    %22 = vector.load %arg2[%c0_3, %c0_4, %c0_5, %c0_6] : memref<1x8x8x8xf32, #tpu.memory_space<vmem>>, vector<1x8x8x8xf32>
    tpu.vector_store %arg2[%c0_3, %c0_4, %c0_5, %c0_6], %21 {strides = array<i32>} : memref<1x8x8x8xf32, #tpu.memory_space<vmem>>, vector<1x8x8x8xf32>,
    return
  }
  func.func @transform_0(%arg0: i32) -> (i32, i32, i32, i32) {
    %c0_i32 = arith.constant 0 : i32
    %c0_i32_0 = arith.constant 0 : i32
    %c0_i32_1 = arith.constant 0 : i32
    %c0_i32_2 = arith.constant 0 : i32
    return %arg0, %c0_i32, %c0_i32_0, %c0_i32_1 : i32, i32, i32, i32
  }
  func.func @transform_1(%arg0: i32) -> (i32, i32, i32, i32) {
    %c0_i32 = arith.constant 0 : i32
    %c0_i32_0 = arith.constant 0 : i32
    %c0_i32_1 = arith.constant 0 : i32
    %c0_i32_2 = arith.constant 0 : i32
    return %arg0, %c0_i32, %c0_i32_0, %c0_i32_1 : i32, i32, i32, i32
  }
}

</mosaic_0001>

<bundles_post_ra>
// kernel: tpu_custom_call.1
= control target key start
LH: loop header
LB: loop body
LE: loop exit
PB: predicated region body
PF: predicated region fallthrough
CT: control target
= control target key end

     0   :  { %6 = vsyncpa [#allocation3], 0  ;;  %s910_s0 = inlined_call_operand.hbm [shape: f32[2,4,16,16], index: 0, kind: input, shape index: {}]   ;;  %s911_s1 = inlined_call_operand.hbm [shape: f32[2,8,8,8], index: 1, kind: output, shape index: {}]  }
   0x1   :  { %8 = vsyncpa [#allocation3 + $0x1], 0 }
   0x2   :  { %9 = vsyncpa [#allocation4], 0 }
   0x3   :  { %11 = vsyncpa [#allocation4 + $0x1], 0  ;;  %s661_s6 = smov 0   ;;  %s663_s7 = smov 0  }
   0x4   :  { %s665_s8 = smov 0   ;;  %s667_s9 = smov 0  }
   0x5 LB: > { %s682_s10 = sadd.s32 4294967295, %s638_s9   ;;  %s469_s11 = sadd.s32 4294967294, %s638_s9   ;;  %s638_s9 = sphi %s667_s9, %s921_s9   ;;  %s634_s8 = sphi %s665_s8, %s920_s8   ;;  %s630_s7 = sphi %s663_s7, %s919_s7   ;;  %s626_s6 = sphi %s661_s6, %s918_s6  }
   0x6   : > { %s686_s12 = sadd.s32 1, %s638_s9   ;;  %s24_s13 = sadd.s32 1, %s634_s8 }
   0x7   : > { %s21_s14 = ssub.s32 %s638_s9, %s686_s12  ;;  %p31_p0 = scmp.ne.s32.totalorder %s634_s8, %s630_s7 }
   0x8   : > { %p22_p1 = scmp.eq.s32.totalorder %s21_s14, 0  ;;  %p32_p2 = scmp.eq.s32.totalorder %s638_s9, 0 }
   0x9   : > { %p37_p3 = scmp.ne.s32.totalorder %s630_s7, %s626_s6  ;;  %p38_p4 = scmp.eq.s32.totalorder %s682_s10, 0 }
   0xa   : > { %s698_s15 = scalar_select %p22_p1, %s634_s8, %s24_s13  }
   0xb   : > { %p700_p5 = por %p32_p2, %p31_p0  ;;  %p704_p6 = por %p38_p4, %p37_p3 }
   0xc   : > { %p61_p7 = scmp.eq.s32.totalorder %s682_s10, 1  ;;  %p67_p8 = scmp.eq.s32.totalorder %s469_s11, 1 }
   0xd   : > { %p497_p10 = scmp.lt.s32.totalorder %s638_s9, 2  ;;  %s87_s20 = sand.u32 1, %s634_s8  }
   0xe   : > { %p711_p11 = por %p61_p7, %p31_p0  ;;  %p715_p12 = por %p67_p8, %p37_p3 }
   0xf   : > { %s483_s21 = sshll.u32 %s638_s9, 6  ;;  %s472_s22 = sshll.u32 %s87_s20, 6 }
  0x10   : > { %s96_s25 = scalar_lea.hbm %s910_s0, %s483_s21  ;;  %s91_s27 = scalar_lea.vmem [#allocation2], %s472_s22 }
  0x11   : > { %s97_s26 = sshll.u32 %s96_s25, 4  ;;  %s99_s28 = sshll.u32 %s91_s27, 4  ;;  %s98_s26 = int_to_ptr.hbm [resolvable:$true] %s97_s26  ;;  %s100_s28 = int_to_ptr.vmem [resolvable:$true] %s99_s28 }
  0x12   : > { %p726_p13 = pnand %p497_p10, %p700_p5  ;;  %p475_p0 = scmp.ge.s32.totalorder %s638_s9, 1 }
  0x13   : > { %p107_p1 = scmp.lt.s32.totalorder %s638_s9, 3  ;;  %s88_s30 = scalar_lea.sflag [#allocation3], %s87_s20 }
  0x14   : > { %s542_s2 = sshra.s32 %s98_s26, 4  ;;  %p546_p3 = pneg %p726_p13  ;;  %s543_s2 = int_to_ptr.hbm [resolvable:$true] %s542_s2 }
  0x15   : > { %s544_s3 = scalar_lea.hbm %s543_s2, 64  ;;  %s549_s11 = scalar_lea.hbm %s910_s0, 128 }
  0x16   : > { %p545_p2 = scmp.ne.s32.totalorder %s543_s2, %s544_s3  ;;  %p550_p5 = scmp.lt.s32.totalorder %s543_s2, %s910_s0 }
  0x17   : > { %p551_p8 = scmp.lt.s32.totalorder %s549_s11, %s544_s3 }
  0x18   : > { %p547_p4 = pnand %p546_p3, %p545_p2 }
  0x19   : > { %p552_p10 = por %p551_p8, %p550_p5 }
  0x1a   : > { %p548_p7 = pneg %p547_p4 }
  0x1c   : > { %p553_p9 = pnand %p552_p10, %p548_p7 }
  0x1e   : > { %556 = shalt.err (!%p553_p9)
}
  0x1f   : > { %s640_s16 = smov 128   ;;  %s641_s20 = smov 8  }
  0x20   : > { %492 = dma.hbm_to_vmem [thread:$0]  (!%p726_p13), %s98_s26, 1024, %s100_s28, %s88_s30, %s640_s16, %s640_s16, %s641_s20  }
  0x21   : > { %p108_p2 = pnand %p475_p0, %p107_p1 }
  0x22   : > { %s747_s21 = sand.u32 (!%p108_p2), 1, %s630_s7  }
  0x23   : > { %111 = sbr.rel (%p108_p2) target bundleno = 248 (0xf8), region = 24  ;;  %s476_s22 = sshll.u32 (!%p108_p2), %s747_s21, 6 }
  0x24   : > { %s114_s23 = scalar_lea.sflag (!%p108_p2), [#allocation3], %s747_s21  ;;  %s753_s24 = scalar_lea.vmem (!%p108_p2), [#allocation2], %s476_s22 }
  0x28   : > { %617 = dma.done.wait (%p704_p6), %s114_s23, 1024  }
  0x29   : > { %619 = vsyncadd (%p704_p6), %s114_s23, 4294966272  ;;  %vm209_vm0 = vcmask 1040384   ;;  %vm214_vm1 = vcmask 1041408   ;;  %vm219_vm2 = vcmask 1042432   ;;  %v141_v0 = vld [vmem:[%s753_s24 + $0x20] sm:$0xff]  ;;  %v142_v1 = vld [vmem:[%s753_s24 + $0x28] sm:$0xff] }
  0x2a   : > { %vm224_vm3 = vcmask 1043456   ;;  %vm229_vm4 = vcmask 1044480   ;;  %vm234_vm5 = vcmask 1045504   ;;  %v137_v2 = vld [vmem:[%s753_s24] sm:$0xff]  ;;  %v151_v3 = vrot.slane %v141_v0, 1  ;;  %v138_v6 = vld [vmem:[%s753_s24 + $0x8] sm:$0xff] }
  0x2b   : > { %v159_v4 = vrot.slane %v141_v0, 2  ;;  %v167_v5 = vrot.slane %v141_v0, 3  ;;  %vm239_vm6 = vcmask 1046528   ;;  %v179_v7 = vrot.slane %v142_v1, 4  ;;  %v143_v11 = vld [vmem:[%s753_s24 + $0x30] sm:$0xff]  ;;  %v144_v20 = vld [vmem:[%s753_s24 + $0x38] sm:$0xff] }
  0x2c   : > { %v187_v8 = vrot.slane %v142_v1, 5  ;;  %v195_v9 = vrot.slane %v142_v1, 6  ;;  %v149_v10 = vrot.slane %v137_v2, 1  ;;  %v203_v12 = vrot.slane %v142_v1, 7  ;;  %v139_v29 = vld [vmem:[%s753_s24 + $0x10] sm:$0xff]  ;;  %v140_v38 = vld [vmem:[%s753_s24 + $0x18] sm:$0xff] }
  0x2d   : > { %v212_v13 = vsel %vm209_vm0, %v141_v0, %v151_v3  ;;  %v157_v14 = vrot.slane %v137_v2, 2  ;;  %v165_v15 = vrot.slane %v137_v2, 3  ;;  %v177_v17 = vrot.slane %v138_v6, 4  ;;  %s642_s17 = smov 127   ;;  %s643_s25 = smov 126  }
  0x2e   : > { %v217_v16 = vsel %vm214_vm1, %v212_v13, %v159_v4  ;;  %v185_v18 = vrot.slane %v138_v6, 5  ;;  %v193_v19 = vrot.slane %v138_v6, 6  ;;  %v210_v22 = vsel %vm209_vm0, %v137_v2, %v149_v10  ;;  %s644_s26 = smov 125   ;;  %s645_s27 = smov 124  }
  0x2f   : > { %v222_v21 = vsel %vm219_vm2, %v217_v16, %v167_v5  ;;  %v152_v23 = vrot.slane %v143_v11, 1  ;;  %v160_v24 = vrot.slane %v143_v11, 2  ;;  %v201_v26 = vrot.slane %v138_v6, 7  ;;  %s646_s28 = smov 123   ;;  %s647_s29 = smov 122  }
  0x30   : > { %v227_v25 = vsel %vm224_vm3, %v222_v21, %v179_v7  ;;  %v215_v27 = vsel %vm214_vm1, %v210_v22, %v157_v14  ;;  %v168_v28 = vrot.slane %v143_v11, 3  ;;  %v180_v32 = vrot.slane %v144_v20, 4  ;;  %s648_s30 = smov 121   ;;  %s840_s2 = scalar_lea.vmem [#allocation5], %s476_s22 }
  0x31   : > { %v232_v30 = vsel %vm229_vm4, %v227_v25, %v187_v8  ;;  %v220_v31 = vsel %vm219_vm2, %v215_v27, %v165_v15  ;;  %v188_v33 = vrot.slane %v144_v20, 5  ;;  %v196_v36 = vrot.slane %v144_v20, 6  ;;  %s484_s3 = sshll.u32 %s682_s10, 6  ;;  %s393_s10 = sshll.u32 %s840_s2, 4  ;;  %s394_s10 = int_to_ptr.vmem [resolvable:$true] %s393_s10 }
  0x32   : > { %v237_v34 = vsel %vm234_vm5, %v232_v30, %v195_v9  ;;  %v225_v35 = vsel %vm224_vm3, %v220_v31, %v177_v17  ;;  %v213_v37 = vsel %vm209_vm0, %v143_v11, %v152_v23  ;;  %v150_v42 = vrot.slane %v139_v29, 1  ;;  %s392_s11 = scalar_lea.hbm %s911_s1, %s484_s3  ;;  %s381_s14 = scalar_lea.sflag [#allocation4], %s747_s21 }
  0x33   : > { %v779_v39 = vsel %vm239_vm6, %v237_v34, %v203_v12  ;;  %v230_v40 = vsel %vm229_vm4, %v225_v35, %v185_v18  ;;  %v218_v41 = vsel %vm214_vm1, %v213_v37, %v160_v24  ;;  %v158_v45 = vrot.slane %v139_v29, 2  ;;  %s395_s13 = sshll.u32 %s392_s11, 4  ;;  %s592_s24 = scalar_lea.hbm %s911_s1, 128  ;;  %s396_s13 = int_to_ptr.hbm [resolvable:$true] %s395_s13 }
  0x34   : > { %252 = vrot.lane.b32.xlu1 %v779_v39, %s642_s17  ;;  %v235_v43 = vsel %vm234_vm5, %v230_v40, %v193_v19  ;;  %v223_v44 = vsel %vm219_vm2, %v218_v41, %v168_v28  ;;  %v166_v46 = vrot.slane %v139_v29, 3  ;;  %v204_v48 = vrot.slane %v144_v20, 7  ;;  %s586_s16 = sshra.s32 %s396_s13, 4  ;;  %s587_s16 = int_to_ptr.hbm [resolvable:$true] %s586_s16 }
  0x35   : > { %v787_v47 = vsel %vm239_vm6, %v235_v43, %v201_v26  ;;  %v228_v49 = vsel %vm224_vm3, %v223_v44, %v180_v32  ;;  %v178_v50 = vrot.slane %v140_v38, 4  ;;  %v186_v52 = vrot.slane %v140_v38, 5  ;;  %s588_s20 = scalar_lea.hbm %s587_s16, 64  ;;  %p593_p0 = scmp.lt.s32.totalorder %s587_s16, %s911_s1 }
  0x36   : > { %248 = vrot.lane.b32.xlu0 %v787_v47, %s642_s17  ;;  %v233_v51 = vsel %vm229_vm4, %v228_v49, %v188_v33  ;;  %v211_v53 = vsel %vm209_vm0, %v139_v29, %v150_v42  ;;  %260 = vrot.lane.b32.xlu2 %v787_v47, %s643_s25  ;;  %v194_v55 = vrot.slane %v140_v38, 6  ;;  %v202_v57 = vrot.slane %v140_v38, 7  ;;  %p589_p6 = scmp.ne.s32.totalorder %s587_s16, %s588_s20  ;;  %p594_p1 = scmp.lt.s32.totalorder %s592_s24, %s588_s20 }
  0x37   : > { %v238_v54 = vsel %vm234_vm5, %v233_v51, %v196_v36  ;;  %v216_v56 = vsel %vm214_vm1, %v211_v53, %v158_v45  ;;  %vm332_vm7 = vcmask 7168   ;;  %vm337_vm8 = vcmask 15360  }
  0x38   : > { %v221_v58 = vsel %vm219_vm2, %v216_v56, %v166_v46  ;;  %v798_v59 = vsel %vm239_vm6, %v238_v54, %v204_v48  ;;  %vm342_vm9 = vcmask 23552   ;;  %vm347_vm10 = vcmask 31744   ;;  %p590_p9 = pnand %p589_p6, %p711_p11  ;;  %p595_p3 = por %p594_p1, %p593_p0 }
  0x39   : > { %v226_v60 = vsel %vm224_vm3, %v221_v58, %v178_v50  ;;  %vm352_vm11 = vcmask 39936   ;;  %vm362_vm12 = vcmask 56320   ;;  %vm357_vm13 = vcmask 48128  }
  0x3a   : > { %v231_v61 = vsel %vm229_vm4, %v226_v60, %v186_v52  ;;  %vm371_vm14 = vcmask 64512   ;;  %p591_p13 = pneg %p590_p9 }
  0x3b   : > { %v236_v62 = vsel %vm234_vm5, %v231_v61, %v194_v55 }
  0x3c   : > { %254 = vrot.lane.b32.xlu1 %v798_v59, %s642_s17  ;;  %v241_v63 = vsel %vm239_vm6, %v236_v62, %v202_v57  ;;  %p596_p4 = pnand %p595_p3, %p591_p13 }
  0x3e   : > { %250 = vrot.lane.b32.xlu0 %v241_v63, %s642_s17  ;;  %262 = vrot.lane.b32.xlu2 %v241_v63, %s643_s25 }
  0x44   : > { %266 = vrot.lane.b32.xlu1 %v798_v59, %s643_s25 }
  0x46   : > { %264 = vrot.lane.b32.xlu0 %v779_v39, %s643_s25  ;;  %272 = vrot.lane.b32.xlu2 %v787_v47, %s644_s26 }
  0x4c   : > { %276 = vrot.lane.b32.xlu1 %v779_v39, %s644_s26 }
  0x4e   : > { %274 = vrot.lane.b32.xlu0 %v241_v63, %s644_s26  ;;  %278 = vrot.lane.b32.xlu2 %v798_v59, %s644_s26 }
  0x54   : > { %286 = vrot.lane.b32.xlu1 %v241_v63, %s645_s27 }
  0x56   : > { %284 = vrot.lane.b32.xlu0 %v787_v47, %s645_s27  ;;  %288 = vrot.lane.b32.xlu2 %v779_v39, %s645_s27 }
  0x5c   : > { %296 = vrot.lane.b32.xlu1 %v787_v47, %s646_s28 }
  0x5e   : > { %290 = vrot.lane.b32.xlu0 %v798_v59, %s645_s27  ;;  %298 = vrot.lane.b32.xlu2 %v241_v63, %s646_s28 }
  0x64   : > { %302 = vrot.lane.b32.xlu1 %v798_v59, %s646_s28 }
  0x66   : > { %300 = vrot.lane.b32.xlu0 %v779_v39, %s646_s28  ;;  %308 = vrot.lane.b32.xlu2 %v787_v47, %s647_s29 }
  0x6c   : > { %312 = vrot.lane.b32.xlu1 %v779_v39, %s647_s29 }
  0x6e   : > { %310 = vrot.lane.b32.xlu0 %v241_v63, %s647_s29  ;;  %314 = vrot.lane.b32.xlu2 %v798_v59, %s647_s29 }
  0x74   : > { %322 = vrot.lane.b32.xlu1 %v241_v63, %s648_s30 }
  0x76   : > { %320 = vrot.lane.b32.xlu0 %v787_v47, %s648_s30  ;;  %324 = vrot.lane.b32.xlu2 %v779_v39, %s648_s30 }
  0x7e   : > { %326 = vrot.lane.b32.xlu0 %v798_v59, %s648_s30 }
  0x90   : > { %v261_v0 = vpop.permute.xlu2 %260 }
  0x98   : > { %v263_v1 = vpop.permute.xlu2 %262 }
  0xa0   : > { %v273_v2 = vpop.permute.xlu2 %272 }
  0xa6   : > { %v253_v3 = vpop.permute.xlu1 %252 }
  0xa7   : > { %v335_v21 = vsel %vm332_vm7, %v779_v39, %v253_v3 }
  0xa8   : > { %v249_v4 = vpop.permute.xlu0 %248  ;;  %v822_v5 = vpop.permute.xlu2 %278 }
  0xa9   : > { %v333_v25 = vsel %vm332_vm7, %v787_v47, %v249_v4 }
  0xaa   : > { %v338_v32 = vsel %vm337_vm8, %v333_v25, %v261_v0 }
  0xab   : > { %v343_v39 = vsel %vm342_vm9, %v338_v32, %v273_v2 }
  0xae   : > { %v255_v6 = vpop.permute.xlu1 %254 }
  0xaf   : > { %v336_v41 = vsel %vm332_vm7, %v798_v59, %v255_v6 }
  0xb0   : > { %v251_v7 = vpop.permute.xlu0 %250  ;;  %v289_v8 = vpop.permute.xlu2 %288 }
  0xb1   : > { %v334_v26 = vsel %vm332_vm7, %v241_v63, %v251_v7 }
  0xb2   : > { %v339_v33 = vsel %vm337_vm8, %v334_v26, %v263_v1 }
  0xb6   : > { %v267_v9 = vpop.permute.xlu1 %266 }
  0xb7   : > { %v341_v47 = vsel %vm337_vm8, %v336_v41, %v267_v9 }
  0xb8   : > { %v265_v10 = vpop.permute.xlu0 %264  ;;  %v299_v12 = vpop.permute.xlu2 %298  ;;  %v346_v53 = vsel %vm342_vm9, %v341_v47, %v822_v5 }
  0xb9   : > { %v340_v23 = vsel %vm337_vm8, %v335_v21, %v265_v10 }
  0xbe   : > { %v277_v11 = vpop.permute.xlu1 %276 }
  0xbf   : > { %v345_v24 = vsel %vm342_vm9, %v340_v23, %v277_v11 }
  0xc0   : > { %v275_v13 = vpop.permute.xlu0 %274  ;;  %v309_v16 = vpop.permute.xlu2 %308  ;;  %v350_v27 = vsel %vm347_vm10, %v345_v24, %v289_v8 }
  0xc1   : > { %v344_v36 = vsel %vm342_vm9, %v339_v33, %v275_v13 }
  0xc6   : > { %v287_v14 = vpop.permute.xlu1 %286 }
  0xc7   : > { %v349_v38 = vsel %vm347_vm10, %v344_v36, %v287_v14 }
  0xc8   : > { %v285_v15 = vpop.permute.xlu0 %284  ;;  %v315_v19 = vpop.permute.xlu2 %314  ;;  %v354_v42 = vsel %vm352_vm11, %v349_v38, %v299_v12 }
  0xc9   : > { %v348_v40 = vsel %vm347_vm10, %v343_v39, %v285_v15 }
  0xce   : > { %v297_v17 = vpop.permute.xlu1 %296 }
  0xcf   : > { %v353_v43 = vsel %vm352_vm11, %v348_v40, %v297_v17 }
  0xd0   : > { %v291_v18 = vpop.permute.xlu0 %290  ;;  %v325_v28 = vpop.permute.xlu2 %324  ;;  %v358_v48 = vsel %vm357_vm13, %v353_v43, %v309_v16 }
  0xd1   : > { %v351_v54 = vsel %vm347_vm10, %v346_v53, %v291_v18 }
  0xd6   : > { %v303_v20 = vpop.permute.xlu1 %302 }
  0xd7   : > { %v356_v55 = vsel %vm352_vm11, %v351_v54, %v303_v20 }
  0xd8   : > { %v301_v22 = vpop.permute.xlu0 %300  ;;  %v361_v56 = vsel %vm357_vm13, %v356_v55, %v315_v19 }
  0xd9   : > { %v355_v29 = vsel %vm352_vm11, %v350_v27, %v301_v22 }
  0xde   : > { %v313_v30 = vpop.permute.xlu1 %312 }
  0xdf   : > { %v360_v31 = vsel %vm357_vm13, %v355_v29, %v313_v30 }
  0xe0   : > { %v311_v34 = vpop.permute.xlu0 %310  ;;  %v365_v35 = vsel %vm362_vm12, %v360_v31, %v325_v28 }
  0xe1   : > { %v369_v37 = vmul.f32 0.0, %v365_v35  ;;  %374 = vst.msk [vmem:[%s840_s2 + $0x10] sm:$0xff] %vm371_vm14, %v365_v35  ;;  %v359_v44 = vsel %vm357_vm13, %v354_v42, %v311_v34 }
  0xe3   : > { %378 = vst.msk [vmem:[%s840_s2 + $0x30] sm:$0xff] %vm371_vm14, %v369_v37 }
  0xe6   : > { %v323_v45 = vpop.permute.xlu1 %322 }
  0xe7   : > { %v364_v46 = vsel %vm362_vm12, %v359_v44, %v323_v45 }
  0xe8   : > { %v368_v49 = vmul.f32 0.0, %v364_v46  ;;  %373 = vst.msk [vmem:[%s840_s2 + $0x8] sm:$0xff] %vm371_vm14, %v364_v46  ;;  %v321_v50 = vpop.permute.xlu0 %320 }
  0xe9   : > { %v363_v51 = vsel %vm362_vm12, %v358_v48, %v321_v50 }
  0xea   : > { %377 = vst.msk [vmem:[%s840_s2 + $0x28] sm:$0xff] %vm371_vm14, %v368_v49  ;;  %v367_v52 = vmul.f32 0.0, %v363_v51 }
  0xeb   : > { %372 = vst.msk [vmem:[%s840_s2] sm:$0xff] %vm371_vm14, %v363_v51 }
  0xec   : > { %376 = vst.msk [vmem:[%s840_s2 + $0x20] sm:$0xff] %vm371_vm14, %v367_v52 }
  0xf0   : > { %v327_v57 = vpop.permute.xlu0 %326 }
  0xf1   : > { %v366_v58 = vsel %vm362_vm12, %v361_v56, %v327_v57 }
  0xf2   : > { %v370_v59 = vmul.f32 0.0, %v366_v58  ;;  %375 = vst.msk [vmem:[%s840_s2 + $0x18] sm:$0xff] %vm371_vm14, %v366_v58 }
  0xf4   : > { %379 = vst.msk [vmem:[%s840_s2 + $0x38] sm:$0xff] %vm371_vm14, %v370_v59 }
  0xf5   : > { %599 = shalt.err (!%p596_p4)
}
  0xf6   : > { %s649_s21 = smov 128   ;;  %s650_s26 = smov 8  }
  0xf7   : > { %487 = dma.vmem_to_hbm [thread:$0]  (%p711_p11), %s394_s10, 1024, %s396_s13, %s381_s14, %s649_s21, %s649_s21, %s650_s26  }
  0xf8 PF: > { %s410_s27 = sand.u32 1, %s626_s6   ;;  %p917_p7 = scmp.ge.s32.totalorder %s638_s9, 2 }
  0xf9   : > { %s411_s28 = scalar_lea.sflag [#allocation4], %s410_s27 }
  0xfa   : > { %p494_p5 = pnand %p917_p7, %p715_p12 }
  0xfc   : > { %p495_p8 = pneg %p494_p5 }
  0xfe   : > { %621 = dma.done.wait (%p495_p8), %s411_s28, 1024  }
  0xff   : > { %623 = vsyncadd (%p495_p8), %s411_s28, 4294966272  ;;  %p14_p10 = scmp.ge.s32.totalorder %s686_s12, 4   ;;  %s918_s6 = smov %s630_s7 }
 0x100   : > { %s919_s7 = smov %s634_s8  ;;  %s920_s8 = smov %s698_s15 }
 0x101   : > { %s921_s9 = smov %s686_s12  ;;  %16 = sbr.rel (!%p14_p10) target bundleno = 5 (0x5), region = 69 }
 0x106   :  { %417 = vsyncpa [#allocation3], 1 }
 0x107   :  { %419 = vsyncpa [#allocation3 + $0x1], 1 }
 0x108   :  { %420 = vsyncpa [#allocation4], 1 }
 0x109   :  { %422 = vsyncpa [#allocation4 + $0x1], 1 }

</bundles_post_ra>
